<compile_context>
chip_gen: v5e
topology: v5e:2x2
jax: 0.10.0
libtpu: 0.0.40
codegen_flags: <defaults>
</compile_context>

<pallas_src>
import numpy as np
import jax
import jax.numpy as jnp
from jax import lax
from jax.experimental import pallas as pl
from jax.experimental.pallas import tpu as pltpu

BN_EPS = 1e-5
BN_EVAL_SCALE = 1.0 / np.sqrt(1.0 + BN_EPS)   # BatchNorm1d eval w/ default running stats


# ----------------------------------------------------------------------------
# Fused forward kernel: crossnets + projs + branch-mean + MLP + sigmoid
# ----------------------------------------------------------------------------

def _fused_forward_kernel(num_branches, num_layers, mlp_acts):
    """Ref layout (positional):
         per branch k (5 refs): x0 (TB,Dk), wT (L,Dk,Dk), b (L,1,Dk),
                                pw (Dk,M0), pb (1,M0)
         per mlp layer j (2 refs): w (in,out), b (1,out)
         out_ref: (TB, 1)
    """
    num_mlp = len(mlp_acts)

    def kernel(*refs):
        idx = 0
        acc = None
        for _ in range(num_branches):
            x0_ref, wT_ref, b_ref, pw_ref, pb_ref = refs[idx:idx + 5]
            idx += 5

            x0 = x0_ref[...].astype(jnp.float32)
            x = x0
            for i in range(num_layers):                     # L is small -> static unroll
                # xw[b, j] = sum_k (N*W)[j, k] * x[b, k]  ==  x @ (N*W)^T
                xw = jnp.dot(x, wT_ref[i], preferred_element_type=jnp.float32)
                x = x0 * (xw + b_ref[i]) + x

            # proj: Linear + folded-BN + ReLU (+ Dropout = identity in eval)
            hp = jnp.dot(x, pw_ref[...], preferred_element_type=jnp.float32) + pb_ref[...]
            hp = jnp.maximum(hp, 0.0)
            acc = hp if acc is None else acc + hp

        # stack(..., dim=-1).mean(dim=-1)
        y = acc * (1.0 / float(num_branches))

        for j in range(num_mlp):
            w_ref, b_ref = refs[idx:idx + 2]
            idx += 2
            y = jnp.dot(y, w_ref[...], preferred_element_type=jnp.float32) + b_ref[...]
            if mlp_acts[j] == "relu":
                y = jnp.maximum(y, 0.0)
            elif mlp_acts[j] == "sigmoid":
                y = jax.nn.sigmoid(y)

        out_ref = refs[idx]
        out_ref[...] = y.astype(out_ref.dtype)

    return kernel


def _pick_batch_tile(batch):
    """Batch tile: whole batch for small B; multiple-of-8 tile for large B."""
    if batch <= 512:
        return batch
    for tb in (512, 256, 128, 64, 32, 16, 8):
        if batch % tb == 0:
            return tb
    return batch


def fused_forward(x0_list, branch_params, mlp_params):
    """Runs the entire (eval-path) forward in one pallas_call.

    x0_list[k]       : (B, Dk) embedded input of branch k
    branch_params[k] : {"wT": (L,Dk,Dk), "b": (L,1,Dk), "pw": (Dk,M0), "pb": (1,M0)}
    mlp_params[j]    : {"w": (in,out), "b": (1,out), "act": str}
    returns (B, 1) float32 predictions.
    """
    B = x0_list[0].shape[0]
    TB = _pick_batch_tile(B)
    grid = (B // TB,)

    num_layers = branch_params[0]["wT"].shape[0]
    mlp_acts = tuple(layer["act"] for layer in mlp_params)

    in_specs = []
    inputs = []
    for x0, bp in zip(x0_list, branch_params):
        D = x0.shape[1]
        L = bp["wT"].shape[0]
        M0 = bp["pw"].shape[1]
        in_specs += [
            pl.BlockSpec((TB, D), lambda i: (i, 0)),          # batch-tiled activation
            pl.BlockSpec((L, D, D), lambda i: (0, 0, 0)),     # resident weights
            pl.BlockSpec((L, 1, D), lambda i: (0, 0, 0)),
            pl.BlockSpec((D, M0), lambda i: (0, 0)),
            pl.BlockSpec((1, M0), lambda i: (0, 0)),
        ]
        inputs += [x0, bp["wT"], bp["b"], bp["pw"], bp["pb"]]

    for layer in mlp_params:
        w, b = layer["w"], layer["b"]
        in_specs += [
            pl.BlockSpec(w.shape, lambda i: (0, 0)),
            pl.BlockSpec(b.shape, lambda i: (0, 0)),
        ]
        inputs += [w, b]

    out_dim = mlp_params[-1]["w"].shape[1]
    kernel = _fused_forward_kernel(len(x0_list), num_layers, mlp_acts)

    return pl.pallas_call(
        kernel,
        grid=grid,
        out_shape=jax.ShapeDtypeStruct((B, out_dim), jnp.float32),
        in_specs=in_specs,
        out_specs=pl.BlockSpec((TB, out_dim), lambda i: (i, 0)),
        compiler_params=pltpu.CompilerParams(
            dimension_semantics=("parallel",)),   # batch tiles -> megacore on v7x
    )(*inputs)


# ----------------------------------------------------------------------------
# Field-wise orthogonality regularizer (training only; depends only on W)
# ----------------------------------------------------------------------------

def _reg_kernel(blk_ref, out_ref):
    """sum over blocks of || I_E - blk @ blk^T ||_F^2."""
    blk = blk_ref[...].astype(jnp.float32)                   # (N, E, E)
    E = blk.shape[-1]
    # batched blk @ blk^T (contract last dims, batch dim 0)
    bbT = lax.dot_general(blk, blk, (((2,), (2,)), ((0,), (0,))),
                          preferred_element_type=jnp.float32)  # (N, E, E)
    ii = lax.broadcasted_iota(jnp.int32, (E, E), 0)
    jj = lax.broadcasted_iota(jnp.int32, (E, E), 1)
    eye = (ii == jj).astype(jnp.float32)
    diff = eye[None, :, :] - bbT
    out_ref[...] = jnp.reshape(jnp.sum(diff * diff), (1, 1))


def reg_loss(blocks):
    N, E, _ = blocks.shape
    out = pl.pallas_call(
        _reg_kernel,
        grid=(1,),
        out_shape=jax.ShapeDtypeStruct((1, 1), jnp.float32),
        in_specs=[pl.BlockSpec((N, E, E), lambda i: (0, 0, 0))],
        out_specs=pl.BlockSpec((1, 1), lambda i: (0, 0)),
    )(blocks)
    return out[0, 0]


# ----------------------------------------------------------------------------
# Parameter construction (deterministic, synthetic) + one-time preparation
# ----------------------------------------------------------------------------

def _xavier_uniform(key, shape):
    fan_out, fan_in = shape
    bound = float(np.sqrt(6.0 / (fan_in + fan_out)))
    return jax.random.uniform(key, shape, jnp.float32, -bound, bound)


def init_params(key, field_dims, embed_dims, num_layers, mlp_dims):
    """Raw (PyTorch-layout) parameters."""
    F = len(field_dims)
    total_vocab = int(sum(field_dims))
    keys = iter(jax.random.split(key, 256))
    params = {"emb": [], "cross": [], "proj": [], "mlp": []}

    for E in embed_dims:
        D = F * E
        # FeaturesEmbedding: Embedding(sum(field_dims), E), xavier_uniform
        params["emb"].append(_xavier_uniform(next(keys), (total_vocab, E)))
        # WeightedRestrictedCrossNetworkV2 params
        W = jnp.stack([_xavier_uniform(next(keys), (D, D)) for _ in range(num_layers)])
        N = jnp.ones((num_layers, F, F), jnp.float32)
        b = jnp.zeros((num_layers, D), jnp.float32)
        params["cross"].append({"W": W, "N": N, "b": b})
        # proj: Linear(D, mlp_dims[0]) (torch layout (out, in)) + BN + ReLU
        params["proj"].append({"w": _xavier_uniform(next(keys), (mlp_dims[0], D)),
                               "b": jnp.zeros((mlp_dims[0],), jnp.float32)})

    # mlp: MLP(mlp_dims[0], mlp_dims[1:], output_layer=True)
    mlp_layers = []
    in_d = mlp_dims[0]
    for d in mlp_dims[1:]:
        mlp_layers.append({"w": _xavier_uniform(next(keys), (d, in_d)),
                           "b": jnp.zeros((d,), jnp.float32),
                           "act": "relu", "bn": True})
        in_d = d
    mlp_layers.append({"w": _xavier_uniform(next(keys), (1, in_d)),
                       "b": jnp.zeros((1,), jnp.float32),
                       "act": "sigmoid", "bn": False})
    params["mlp"] = mlp_layers
    return params


def prepare_params(params, field_dims, embed_dims, num_layers):
    """One-time weight preparation (hoisted out of the per-step forward path)."""
    F = len(field_dims)
    offsets = jnp.asarray(np.array((0, *np.cumsum(field_dims)[:-1]), dtype=np.int32))

    branches, reg_blocks = [], []
    for k, E in enumerate(embed_dims):
        D = F * E
        cw = params["cross"][k]
        # N expanded per-field to (D, D), masked weight = n_full * W, pre-transposed
        n_full = jnp.repeat(jnp.repeat(cw["N"], E, axis=1), E, axis=2)      # (L, D, D)
        wT = jnp.swapaxes(n_full * cw["W"], 1, 2)                           # (L, D, D)
        b2 = cw["b"].reshape(num_layers, 1, D)
        # proj Linear with BatchNorm(eval) scale folded, transposed to (in, out)
        pw = (params["proj"][k]["w"] * BN_EVAL_SCALE).T                     # (D, M0)
        pb = (params["proj"][k]["b"] * BN_EVAL_SCALE).reshape(1, -1)
        branches.append({"wT": wT, "b": b2, "pw": pw, "pb": pb})
        # field-wise blocks of raw W for the orthogonality regularizer
        blocks = (cw["W"].reshape(num_layers, F, E, F, E)
                         .transpose(0, 1, 3, 2, 4)
                         .reshape(num_layers * F * F, E, E))
        reg_blocks.append(blocks)

    mlp = []
    for layer in params["mlp"]:
        scale = BN_EVAL_SCALE if layer["bn"] else 1.0
        mlp.append({"w": (layer["w"] * scale).T,
                    "b": (layer["b"] * scale).reshape(1, -1),
                    "act": layer["act"]})

    return {"emb": params["emb"], "offsets": offsets,
            "branches": branches, "mlp": mlp, "reg_blocks": reg_blocks}


# ----------------------------------------------------------------------------
# Forward (embedding gather in XLA glue, everything else in one Pallas kernel)
# ----------------------------------------------------------------------------

def forward(prepared, x, training=False):
    B = x.shape[0]
    idx = x + prepared["offsets"][None, :]
    # embedding lookup stays in XLA (tiny gather); TODO(synk): fold into the fused
    # kernel via scalar-prefetch row DMA if the gather matters at serving batch sizes.
    x0_list = [jnp.take(tbl, idx, axis=0).reshape(B, -1) for tbl in prepared["emb"]]

    pred = fused_forward(x0_list, prepared["branches"], prepared["mlp"])[:, 0]

    if training:
        # regularizer depends only on W -> computed only when training
        reg = sum(reg_loss(blk) for blk in prepared["reg_blocks"])
        return pred, 1e-05 * reg
    return pred


# ----------------------------------------------------------------------------

if __name__ == "__main__":
    field_dims = [10, 20, 30, 40]     # num_fields = 4
    embed_dims = [4, 8]
    num_layers = 2
    mlp_dims = [32, 16]
    dropout = 0.2                     # unused in eval mode
    B = 8

    key = jax.random.PRNGKey(0)
    pkey, xkey = jax.random.split(key)
    params = init_params(pkey, field_dims, embed_dims, num_layers, mlp_dims)
    prepared = prepare_params(params, field_dims, embed_dims, num_layers)

    x = jax.random.randint(xkey, (B, len(field_dims)), 0, min(field_dims), dtype=jnp.int32)

    # eval path (single fused pallas_call, no regularizer kernel launched)
    pred = forward(prepared, x, training=False)
    pred = jax.block_until_ready(pred)
    assert pred.shape == (B,)
    assert bool(jnp.all(jnp.isfinite(pred)))

    # training path (adds the regularizer kernels)
    pred_t, reg = forward(prepared, x, training=True)
    pred_t, reg = jax.block_until_ready((pred_t, reg))
    assert pred_t.shape == (B,)
    assert bool(jnp.isfinite(reg))
    assert bool(jnp.allclose(pred, pred_t))

    print("KERNEL_OK")
</pallas_src>

<mosaic_0001>
module attributes {stable_mosaic.version = 11 : i64} {
  func.func @kernel(%arg0: i32, %arg1: memref<8x16xf32, #tpu.memory_space<vmem>>, %arg2: memref<2x16x16xf32, #tpu.memory_space<vmem>>, %arg3: memref<2x1x16xf32, #tpu.memory_space<vmem>>, %arg4: memref<16x32xf32, #tpu.memory_space<vmem>>, %arg5: memref<1x32xf32, #tpu.memory_space<vmem>>, %arg6: memref<8x32xf32, #tpu.memory_space<vmem>>, %arg7: memref<2x32x32xf32, #tpu.memory_space<vmem>>, %arg8: memref<2x1x32xf32, #tpu.memory_space<vmem>>, %arg9: memref<32x32xf32, #tpu.memory_space<vmem>>, %arg10: memref<1x32xf32, #tpu.memory_space<vmem>>, %arg11: memref<32x16xf32, #tpu.memory_space<vmem>>, %arg12: memref<1x16xf32, #tpu.memory_space<vmem>>, %arg13: memref<16x1xf32, #tpu.memory_space<vmem>>, %arg14: memref<1x1xf32, #tpu.memory_space<vmem>>, %arg15: memref<8x1xf32, #tpu.memory_space<vmem>>) attributes {dimension_semantics = [#tpu.dimension_semantics<parallel>], iteration_bounds = array<i64: 1>, scalar_prefetch = 0 : i64, scratch_operands = 0 : i64, tpu.core_type = #tpu.core_type<tc>, window_params = [{transform_indices = @transform_0, window_bounds = array<i64: 8, 16>}, {pipeline_mode = #tpu.pipeline_mode<synchronous>, transform_indices = @transform_1, window_bounds = array<i64: 2, 16, 16>}, {pipeline_mode = #tpu.pipeline_mode<synchronous>, transform_indices = @transform_2, window_bounds = array<i64: 2, 1, 16>}, {pipeline_mode = #tpu.pipeline_mode<synchronous>, transform_indices = @transform_3, window_bounds = array<i64: 16, 32>}, {pipeline_mode = #tpu.pipeline_mode<synchronous>, transform_indices = @transform_4, window_bounds = array<i64: 1, 32>}, {transform_indices = @transform_5, window_bounds = array<i64: 8, 32>}, {pipeline_mode = #tpu.pipeline_mode<synchronous>, transform_indices = @transform_6, window_bounds = array<i64: 2, 32, 32>}, {pipeline_mode = #tpu.pipeline_mode<synchronous>, transform_indices = @transform_7, window_bounds = array<i64: 2, 1, 32>}, {pipeline_mode = #tpu.pipeline_mode<synchronous>, transform_indices = @transform_8, window_bounds = array<i64: 32, 32>}, {pipeline_mode = #tpu.pipeline_mode<synchronous>, transform_indices = @transform_9, window_bounds = array<i64: 1, 32>}, {pipeline_mode = #tpu.pipeline_mode<synchronous>, transform_indices = @transform_10, window_bounds = array<i64: 32, 16>}, {pipeline_mode = #tpu.pipeline_mode<synchronous>, transform_indices = @transform_11, window_bounds = array<i64: 1, 16>}, {pipeline_mode = #tpu.pipeline_mode<synchronous>, transform_indices = @transform_12, window_bounds = array<i64: 16, 1>}, {pipeline_mode = #tpu.pipeline_mode<synchronous>, transform_indices = @transform_13, window_bounds = array<i64: 1, 1>}, {transform_indices = @transform_14, window_bounds = array<i64: 8, 1>}]} {
    %c0 = arith.constant 0 : index
    %c0_0 = arith.constant 0 : index
    %0 = vector.load %arg1[%c0, %c0_0] : memref<8x16xf32, #tpu.memory_space<vmem>>, vector<8x16xf32>
    %c0_1 = arith.constant 0 : index
    %c0_2 = arith.constant 0 : index
    %c0_3 = arith.constant 0 : index
    %1 = vector.load %arg2[%c0_1, %c0_2, %c0_3] : memref<2x16x16xf32, #tpu.memory_space<vmem>>, vector<1x16x16xf32>
    %2 = vector.shape_cast %1 : vector<1x16x16xf32> to vector<16x16xf32>
    %cst = arith.constant dense<0.000000e+00> : vector<8x16xf32>
    %3 = tpu.matmul %0, %2, %cst {dimension_numbers = #tpu.dot_dimension_numbers<[1], [0], [0], [1], [0, 0, 1, 1], [], []>} : vector<8x16xf32>, vector<16x16xf32>, vector<8x16xf32> -> vector<8x16xf32>
    %c0_4 = arith.constant 0 : index
    %c0_5 = arith.constant 0 : index
    %c0_6 = arith.constant 0 : index
    %4 = vector.load %arg3[%c0_4, %c0_5, %c0_6] : memref<2x1x16xf32, #tpu.memory_space<vmem>>, vector<1x1x16xf32>
    %5 = vector.shape_cast %4 : vector<1x1x16xf32> to vector<1x16xf32>
    %6 = vector.broadcast %5 : vector<1x16xf32> to vector<8x16xf32>
    %7 = arith.addf %3, %6 : vector<8x16xf32>
    %8 = arith.mulf %0, %7 : vector<8x16xf32>
    %9 = arith.addf %8, %0 : vector<8x16xf32>
    %c1 = arith.constant 1 : index
    %c0_7 = arith.constant 0 : index
    %c0_8 = arith.constant 0 : index
    %10 = vector.load %arg2[%c1, %c0_7, %c0_8] : memref<2x16x16xf32, #tpu.memory_space<vmem>>, vector<1x16x16xf32>
    %11 = vector.shape_cast %10 : vector<1x16x16xf32> to vector<16x16xf32>
    %cst_9 = arith.constant dense<0.000000e+00> : vector<8x16xf32>
    %12 = tpu.matmul %9, %11, %cst_9 {dimension_numbers = #tpu.dot_dimension_numbers<[1], [0], [0], [1], [0, 0, 1, 1], [], []>} : vector<8x16xf32>, vector<16x16xf32>, vector<8x16xf32> -> vector<8x16xf32>
    %c1_10 = arith.constant 1 : index
    %c0_11 = arith.constant 0 : index
    %c0_12 = arith.constant 0 : index
    %13 = vector.load %arg3[%c1_10, %c0_11, %c0_12] : memref<2x1x16xf32, #tpu.memory_space<vmem>>, vector<1x1x16xf32>
    %14 = vector.shape_cast %13 : vector<1x1x16xf32> to vector<1x16xf32>
    %15 = vector.broadcast %14 : vector<1x16xf32> to vector<8x16xf32>
    %16 = arith.addf %12, %15 : vector<8x16xf32>
    %17 = arith.mulf %0, %16 : vector<8x16xf32>
    %18 = arith.addf %17, %9 : vector<8x16xf32>
    %c0_13 = arith.constant 0 : index
    %c0_14 = arith.constant 0 : index
    %19 = vector.load %arg4[%c0_13, %c0_14] : memref<16x32xf32, #tpu.memory_space<vmem>>, vector<16x32xf32>
    %cst_15 = arith.constant dense<0.000000e+00> : vector<8x32xf32>
    %20 = tpu.matmul %18, %19, %cst_15 {dimension_numbers = #tpu.dot_dimension_numbers<[1], [0], [0], [1], [0, 0, 1, 1], [], []>} : vector<8x16xf32>, vector<16x32xf32>, vector<8x32xf32> -> vector<8x32xf32>
    %c0_16 = arith.constant 0 : index
    %c0_17 = arith.constant 0 : index
    %21 = vector.load %arg5[%c0_16, %c0_17] : memref<1x32xf32, #tpu.memory_space<vmem>>, vector<1x32xf32>
    %22 = vector.broadcast %21 : vector<1x32xf32> to vector<8x32xf32>
    %23 = arith.addf %20, %22 : vector<8x32xf32>
    %cst_18 = arith.constant 0.000000e+00 : f32
    %24 = vector.broadcast %cst_18 : f32 to vector<8x32xf32>
    %25 = arith.maximumf %23, %24 : vector<8x32xf32>
    %c0_19 = arith.constant 0 : index
    %c0_20 = arith.constant 0 : index
    %26 = vector.load %arg6[%c0_19, %c0_20] : memref<8x32xf32, #tpu.memory_space<vmem>>, vector<8x32xf32>
    %c0_21 = arith.constant 0 : index
    %c0_22 = arith.constant 0 : index
    %c0_23 = arith.constant 0 : index
    %27 = vector.load %arg7[%c0_21, %c0_22, %c0_23] : memref<2x32x32xf32, #tpu.memory_space<vmem>>, vector<1x32x32xf32>
    %28 = vector.shape_cast %27 : vector<1x32x32xf32> to vector<32x32xf32>
    %cst_24 = arith.constant dense<0.000000e+00> : vector<8x32xf32>
    %29 = tpu.matmul %26, %28, %cst_24 {dimension_numbers = #tpu.dot_dimension_numbers<[1], [0], [0], [1], [0, 0, 1, 1], [], []>} : vector<8x32xf32>, vector<32x32xf32>, vector<8x32xf32> -> vector<8x32xf32>
    %c0_25 = arith.constant 0 : index
    %c0_26 = arith.constant 0 : index
    %c0_27 = arith.constant 0 : index
    %30 = vector.load %arg8[%c0_25, %c0_26, %c0_27] : memref<2x1x32xf32, #tpu.memory_space<vmem>>, vector<1x1x32xf32>
    %31 = vector.shape_cast %30 : vector<1x1x32xf32> to vector<1x32xf32>
    %32 = vector.broadcast %31 : vector<1x32xf32> to vector<8x32xf32>
    %33 = arith.addf %29, %32 : vector<8x32xf32>
    %34 = arith.mulf %26, %33 : vector<8x32xf32>
    %35 = arith.addf %34, %26 : vector<8x32xf32>
    %c1_28 = arith.constant 1 : index
    %c0_29 = arith.constant 0 : index
    %c0_30 = arith.constant 0 : index
    %36 = vector.load %arg7[%c1_28, %c0_29, %c0_30] : memref<2x32x32xf32, #tpu.memory_space<vmem>>, vector<1x32x32xf32>
    %37 = vector.shape_cast %36 : vector<1x32x32xf32> to vector<32x32xf32>
    %cst_31 = arith.constant dense<0.000000e+00> : vector<8x32xf32>
    %38 = tpu.matmul %35, %37, %cst_31 {dimension_numbers = #tpu.dot_dimension_numbers<[1], [0], [0], [1], [0, 0, 1, 1], [], []>} : vector<8x32xf32>, vector<32x32xf32>, vector<8x32xf32> -> vector<8x32xf32>
    %c1_32 = arith.constant 1 : index
    %c0_33 = arith.constant 0 : index
    %c0_34 = arith.constant 0 : index
    %39 = vector.load %arg8[%c1_32, %c0_33, %c0_34] : memref<2x1x32xf32, #tpu.memory_space<vmem>>, vector<1x1x32xf32>
    %40 = vector.shape_cast %39 : vector<1x1x32xf32> to vector<1x32xf32>
    %41 = vector.broadcast %40 : vector<1x32xf32> to vector<8x32xf32>
    %42 = arith.addf %38, %41 : vector<8x32xf32>
    %43 = arith.mulf %26, %42 : vector<8x32xf32>
    %44 = arith.addf %43, %35 : vector<8x32xf32>
    %c0_35 = arith.constant 0 : index
    %c0_36 = arith.constant 0 : index
    %45 = vector.load %arg9[%c0_35, %c0_36] : memref<32x32xf32, #tpu.memory_space<vmem>>, vector<32x32xf32>
    %cst_37 = arith.constant dense<0.000000e+00> : vector<8x32xf32>
    %46 = tpu.matmul %44, %45, %cst_37 {dimension_numbers = #tpu.dot_dimension_numbers<[1], [0], [0], [1], [0, 0, 1, 1], [], []>} : vector<8x32xf32>, vector<32x32xf32>, vector<8x32xf32> -> vector<8x32xf32>
    %c0_38 = arith.constant 0 : index
    %c0_39 = arith.constant 0 : index
    %47 = vector.load %arg10[%c0_38, %c0_39] : memref<1x32xf32, #tpu.memory_space<vmem>>, vector<1x32xf32>
    %48 = vector.broadcast %47 : vector<1x32xf32> to vector<8x32xf32>
    %49 = arith.addf %46, %48 : vector<8x32xf32>
    %cst_40 = arith.constant 0.000000e+00 : f32
    %50 = vector.broadcast %cst_40 : f32 to vector<8x32xf32>
    %51 = arith.maximumf %49, %50 : vector<8x32xf32>
    %52 = arith.addf %25, %51 : vector<8x32xf32>
    %cst_41 = arith.constant 5.000000e-01 : f32
    %53 = vector.broadcast %cst_41 : f32 to vector<8x32xf32>
    %54 = arith.mulf %52, %53 : vector<8x32xf32>
    %c0_42 = arith.constant 0 : index
    %c0_43 = arith.constant 0 : index
    %55 = vector.load %arg11[%c0_42, %c0_43] : memref<32x16xf32, #tpu.memory_space<vmem>>, vector<32x16xf32>
    %cst_44 = arith.constant dense<0.000000e+00> : vector<8x16xf32>
    %56 = tpu.matmul %54, %55, %cst_44 {dimension_numbers = #tpu.dot_dimension_numbers<[1], [0], [0], [1], [0, 0, 1, 1], [], []>} : vector<8x32xf32>, vector<32x16xf32>, vector<8x16xf32> -> vector<8x16xf32>
    %c0_45 = arith.constant 0 : index
    %c0_46 = arith.constant 0 : index
    %57 = vector.load %arg12[%c0_45, %c0_46] : memref<1x16xf32, #tpu.memory_space<vmem>>, vector<1x16xf32>
    %58 = vector.broadcast %57 : vector<1x16xf32> to vector<8x16xf32>
    %59 = arith.addf %56, %58 : vector<8x16xf32>
    %cst_47 = arith.constant 0.000000e+00 : f32
    %60 = vector.broadcast %cst_47 : f32 to vector<8x16xf32>
    %61 = arith.maximumf %59, %60 : vector<8x16xf32>
    %c0_48 = arith.constant 0 : index
    %c0_49 = arith.constant 0 : index
    %62 = vector.load %arg13[%c0_48, %c0_49] : memref<16x1xf32, #tpu.memory_space<vmem>>, vector<16x1xf32>
    %cst_50 = arith.constant dense<0.000000e+00> : vector<8x1xf32>
    %63 = tpu.matmul %61, %62, %cst_50 {dimension_numbers = #tpu.dot_dimension_numbers<[1], [0], [0], [1], [0, 0, 1, 1], [], []>} : vector<8x16xf32>, vector<16x1xf32>, vector<8x1xf32> -> vector<8x1xf32>
    %c0_51 = arith.constant 0 : index
    %c0_52 = arith.constant 0 : index
    %64 = vector.load %arg14[%c0_51, %c0_52] : memref<1x1xf32, #tpu.memory_space<vmem>>, vector<1x1xf32>
    %65 = vector.broadcast %64 : vector<1x1xf32> to vector<8x1xf32>
    %66 = arith.addf %63, %65 : vector<8x1xf32>
    %67 = arith.negf %66 : vector<8x1xf32>
    %68 = math.exp %67 : vector<8x1xf32>
    %cst_53 = arith.constant 1.000000e+00 : f32
    %69 = vector.broadcast %cst_53 : f32 to vector<8x1xf32>
    %70 = arith.addf %69, %68 : vector<8x1xf32>
    %71 = arith.divf %69, %70 : vector<8x1xf32>
    %c0_54 = arith.constant 0 : index
    %c0_55 = arith.constant 0 : index
    %72 = vector.load %arg15[%c0_54, %c0_55] : memref<8x1xf32, #tpu.memory_space<vmem>>, vector<8x1xf32>
    tpu.vector_store %arg15[%c0_54, %c0_55], %71 {strides = array<i32>} : memref<8x1xf32, #tpu.memory_space<vmem>>, vector<8x1xf32>,
    return
  }
  func.func @transform_0(%arg0: i32) -> (i32, i32) {
    %c0_i32 = arith.constant 0 : i32
    %c0_i32_0 = arith.constant 0 : i32
    return %arg0, %c0_i32 : i32, i32
  }
  func.func @transform_1(%arg0: i32) -> (i32, i32, i32) {
    %c0_i32 = arith.constant 0 : i32
    %c0_i32_0 = arith.constant 0 : i32
    %c0_i32_1 = arith.constant 0 : i32
    %c0_i32_2 = arith.constant 0 : i32
    return %c0_i32, %c0_i32_0, %c0_i32_1 : i32, i32, i32
  }
  func.func @transform_2(%arg0: i32) -> (i32, i32, i32) {
    %c0_i32 = arith.constant 0 : i32
    %c0_i32_0 = arith.constant 0 : i32
    %c0_i32_1 = arith.constant 0 : i32
    %c0_i32_2 = arith.constant 0 : i32
    return %c0_i32, %c0_i32_0, %c0_i32_1 : i32, i32, i32
  }
  func.func @transform_3(%arg0: i32) -> (i32, i32) {
    %c0_i32 = arith.constant 0 : i32
    %c0_i32_0 = arith.constant 0 : i32
    %c0_i32_1 = arith.constant 0 : i32
    return %c0_i32, %c0_i32_0 : i32, i32
  }
  func.func @transform_4(%arg0: i32) -> (i32, i32) {
    %c0_i32 = arith.constant 0 : i32
    %c0_i32_0 = arith.constant 0 : i32
    %c0_i32_1 = arith.constant 0 : i32
    return %c0_i32, %c0_i32_0 : i32, i32
  }
  func.func @transform_5(%arg0: i32) -> (i32, i32) {
    %c0_i32 = arith.constant 0 : i32
    %c0_i32_0 = arith.constant 0 : i32
    return %arg0, %c0_i32 : i32, i32
  }
  func.func @transform_6(%arg0: i32) -> (i32, i32, i32) {
    %c0_i32 = arith.constant 0 : i32
    %c0_i32_0 = arith.constant 0 : i32
    %c0_i32_1 = arith.constant 0 : i32
    %c0_i32_2 = arith.constant 0 : i32
    return %c0_i32, %c0_i32_0, %c0_i32_1 : i32, i32, i32
  }
  func.func @transform_7(%arg0: i32) -> (i32, i32, i32) {
    %c0_i32 = arith.constant 0 : i32
    %c0_i32_0 = arith.constant 0 : i32
    %c0_i32_1 = arith.constant 0 : i32
    %c0_i32_2 = arith.constant 0 : i32
    return %c0_i32, %c0_i32_0, %c0_i32_1 : i32, i32, i32
  }
  func.func @transform_8(%arg0: i32) -> (i32, i32) {
    %c0_i32 = arith.constant 0 : i32
    %c0_i32_0 = arith.constant 0 : i32
    %c0_i32_1 = arith.constant 0 : i32
    return %c0_i32, %c0_i32_0 : i32, i32
  }
  func.func @transform_9(%arg0: i32) -> (i32, i32) {
    %c0_i32 = arith.constant 0 : i32
    %c0_i32_0 = arith.constant 0 : i32
    %c0_i32_1 = arith.constant 0 : i32
    return %c0_i32, %c0_i32_0 : i32, i32
  }
  func.func @transform_10(%arg0: i32) -> (i32, i32) {
    %c0_i32 = arith.constant 0 : i32
    %c0_i32_0 = arith.constant 0 : i32
    %c0_i32_1 = arith.constant 0 : i32
    return %c0_i32, %c0_i32_0 : i32, i32
  }
  func.func @transform_11(%arg0: i32) -> (i32, i32) {
    %c0_i32 = arith.constant 0 : i32
    %c0_i32_0 = arith.constant 0 : i32
    %c0_i32_1 = arith.constant 0 : i32
    return %c0_i32, %c0_i32_0 : i32, i32
  }
  func.func @transform_12(%arg0: i32) -> (i32, i32) {
    %c0_i32 = arith.constant 0 : i32
    %c0_i32_0 = arith.constant 0 : i32
    %c0_i32_1 = arith.constant 0 : i32
    return %c0_i32, %c0_i32_0 : i32, i32
  }
  func.func @transform_13(%arg0: i32) -> (i32, i32) {
    %c0_i32 = arith.constant 0 : i32
    %c0_i32_0 = arith.constant 0 : i32
    %c0_i32_1 = arith.constant 0 : i32
    return %c0_i32, %c0_i32_0 : i32, i32
  }
  func.func @transform_14(%arg0: i32) -> (i32, i32) {
    %c0_i32 = arith.constant 0 : i32
    %c0_i32_0 = arith.constant 0 : i32
    return %arg0, %c0_i32 : i32, i32
  }
}

</mosaic_0001>

<bundles_post_ra>
// kernel: tpu_custom_call.1
= control target key start
LH: loop header
LB: loop body
LE: loop exit
PB: predicated region body
PF: predicated region fallthrough
CT: control target
= control target key end

     0   :  { %s776_s0 = inlined_call_operand.vmem [shape: f32[8,16], index: 0, kind: input, shape index: {}]   ;;  %s777_s1 = inlined_call_operand.vmem [shape: f32[2,16,16], index: 1, kind: input, shape index: {}]   ;;  %s778_s2 = inlined_call_operand.vmem [shape: f32[2,1,16], index: 2, kind: input, shape index: {}]   ;;  %s779_s3 = inlined_call_operand.vmem [shape: f32[16,32], index: 3, kind: input, shape index: {}]   ;;  %s780_s4 = inlined_call_operand.hbm [shape: f32[1,32], index: 4, kind: input, shape index: {}]   ;;  %s781_s5 = inlined_call_operand.hbm [shape: f32[8,32], index: 5, kind: input, shape index: {}]   ;;  %s782_s6 = inlined_call_operand.hbm [shape: f32[2,32,32], index: 6, kind: input, shape index: {}]   ;;  %s783_s7 = inlined_call_operand.vmem [shape: f32[2,1,32], index: 7, kind: input, shape index: {}]   ;;  %s784_s8 = inlined_call_operand.hbm [shape: f32[32,32], index: 8, kind: input, shape index: {}]   ;;  %s785_s9 = inlined_call_operand.hbm [shape: f32[1,32], index: 9, kind: input, shape index: {}]   ;;  %s786_s10 = inlined_call_operand.vmem [shape: f32[32,16], index: 10, kind: input, shape index: {}]   ;;  %s787_s11 = inlined_call_operand.hbm [shape: f32[1,16], index: 11, kind: input, shape index: {}]   ;;  %s788_s12 = inlined_call_operand.vmem [shape: f32[16,1], index: 12, kind: input, shape index: {}]   ;;  %s789_s13 = inlined_call_operand.<no memory space> [shape: f32[1,1], index: 13, kind: input, shape index: {}]   ;;  %s790_s14 = inlined_call_operand.vmem [shape: f32[8,1], index: 14, kind: output, shape index: {}]  }
   0x1   :  { %v19_v0 = vstv %s789_s13 }
   0x2   :  { %20 = vst [vmem:[#allocation2] sm:$0x1] %v19_v0 }
   0x3   :  { %21 = vsyncpa [#allocation4], 0 }
   0x4   :  { %22 = vsyncpa [#allocation6], 0 }
   0x5   :  { %23 = vsyncpa [#allocation9], 0  ;;  %s49_s17 = sshll.u32 %s781_s5, 4  ;;  %s50_s17 = int_to_ptr.hbm [resolvable:$true] %s49_s17 }
   0x6   :  { %24 = vsyncpa [#allocation12], 0  ;;  %s610_s18 = smov [#allocation5]   ;;  %s74_s22 = sshll.u32 %s784_s8, 4  ;;  %s75_s22 = int_to_ptr.hbm [resolvable:$true] %s74_s22 }
   0x7   :  { %s51_s19 = sshll.u32 %s610_s18, 4  ;;  %s611_s13 = smov [#allocation8]   ;;  %s52_s19 = int_to_ptr.vmem [resolvable:$true] %s51_s19 }
   0x8   :  { %54 = dma.hbm_to_vmem [thread:$0]  %s50_s17, 128, %s52_s19, [#allocation6]  }
   0x9   :  { %s76_s23 = sshll.u32 %s611_s13, 4  ;;  %s38_s26 = sshll.u32 %s780_s4, 4  ;;  %s77_s23 = int_to_ptr.vmem [resolvable:$true] %s76_s23  ;;  %s39_s26 = int_to_ptr.hbm [resolvable:$true] %s38_s26 }
   0xa   :  { %s612_s5 = smov 128   ;;  %s613_s27 = smov 8  }
   0xb   :  { %82 = dma.hbm_to_vmem [thread:$0]  %s75_s22, 512, %s77_s23, [#allocation9], %s612_s5, %s612_s5, %s613_s27  }
   0xc   :  { %s59_s30 = sshll.u32 %s782_s6, 4  ;;  %s614_s15 = smov [#allocation3]   ;;  %s60_s30 = int_to_ptr.hbm [resolvable:$true] %s59_s30 }
   0xd   :  { %s40_s16 = sshll.u32 %s614_s15, 4  ;;  %s615_s8 = smov [#allocation7]   ;;  %s41_s16 = int_to_ptr.vmem [resolvable:$true] %s40_s16 }
   0xe   :  { %43 = dma.hbm_to_vmem [thread:$0]  %s39_s26, 16, %s41_s16, [#allocation4]  }
   0xf   :  { %s61_s17 = sshll.u32 %s615_s8, 4  ;;  %s88_s4 = sshll.u32 %s785_s9, 4  ;;  %s62_s17 = int_to_ptr.vmem [resolvable:$true] %s61_s17  ;;  %s89_s4 = int_to_ptr.hbm [resolvable:$true] %s88_s4 }
  0x10   :  { %67 = dma.hbm_to_vmem [thread:$0]  %s60_s30, 1024, %s62_s17, [#allocation6], %s612_s5, %s612_s5, %s613_s27  }
  0x11   :  { %s101_s22 = sshll.u32 %s787_s11, 4  ;;  %s616_s13 = smov [#allocation10]   ;;  %s102_s22 = int_to_ptr.hbm [resolvable:$true] %s101_s22 }
  0x12   :  { %s90_s6 = sshll.u32 %s616_s13, 4  ;;  %s617_s23 = smov [#allocation11]   ;;  %s91_s6 = int_to_ptr.vmem [resolvable:$true] %s90_s6 }
  0x13   :  { %93 = dma.hbm_to_vmem [thread:$0]  %s89_s4, 16, %s91_s6, [#allocation9]  }
  0x14   :  { %s103_s24 = sshll.u32 %s617_s23, 4  ;;  %s104_s24 = int_to_ptr.vmem [resolvable:$true] %s103_s24 }
  0x15   :  { %106 = dma.hbm_to_vmem [thread:$0]  %s102_s22, 16, %s104_s24, [#allocation12]  }
  0x16   :  { %602 = dma.done.wait [#allocation4], 16  }
  0x17   :  { %603 = vsyncadd [#allocation4], 4294967280 }
  0x18   :  { %604 = dma.done.wait [#allocation6], 1152  }
  0x19   :  { %605 = vsyncadd [#allocation6], 4294966144 }
  0x1a   :  { %606 = dma.done.wait [#allocation9], 528  }
  0x1b   :  { %607 = vsyncadd [#allocation9], 4294966768 }
  0x1c   :  { %608 = dma.done.wait [#allocation12], 16  }
  0x1d   :  { %609 = vsyncadd [#allocation12], 4294967280  ;;  %v137_v1 = vld [vmem:[%s777_s1 + $0x8] sm:$0xff]  ;;  %v136_v3 = vld [vmem:[%s777_s1] sm:$0xff]  ;;  %vm142_vm0 = vcmask 130048   ;;  %vm240_vm1 = vcmask 261120  }
  0x1e   :  { %v235_v2 = vld [vmem:[#allocation7 + $0x18] sm:$0xff]  ;;  %160 = vmatpush.msra.mxu0 %v137_v1  ;;  %v234_v4 = vld [vmem:[#allocation7 + $0x10] sm:$0xff]  ;;  %v233_v6 = vld [vmem:[#allocation7 + $0x8] sm:$0xff]  ;;  %vm415_vm5 = vcmask 7168  }
  0x1f   :  { %256 = vmatpush.msra.mxu3 %v235_v2  ;;  %v135_v5 = vld [vmem:[%s776_s0] sm:$0xff]  ;;  %v232_v7 = vld [vmem:[#allocation7] sm:$0xff]  ;;  %v427_v9 = vld [vmem:[%s777_s1 + $0x18] sm:$0xff] }
  0x20   :  { %161 = vmatpush.msra.mxu0 %v136_v3  ;;  %v231_v8 = vld [vmem:[#allocation5] sm:$0xff]  ;;  %v426_v10 = vld [vmem:[%s777_s1 + $0x10] sm:$0xff]  ;;  %193 = vmatpush.msra.mxu1 %v427_v9  ;;  %v269_v12 = vld [vmem:[#allocation7 + $0x30] sm:$0xff] }
  0x21   :  { %257 = vmatpush.msra.mxu3 %v234_v4  ;;  %425 = vmatmul.msk.f32.vlgmr.msra.gmra.mxu0 %vm142_vm0, %v135_v5  ;;  %v270_v11 = vld [vmem:[#allocation7 + $0x38] sm:$0xff]  ;;  %v268_v13 = vld [vmem:[#allocation7 + $0x28] sm:$0xff]  ;;  %v267_v14 = vld [vmem:[#allocation7 + $0x20] sm:$0xff] }
  0x22   :  { %194 = vmatpush.msra.mxu1 %v426_v10  ;;  %291 = vmatpush.msrb.mxu0 %v270_v11  ;;  %v446_v15 = vld [vmem:[%s778_s2] ss:$0 sm:$0xff]  ;;  %v202_v25 = vld [vmem:[%s779_s3 + $0x8] sm:$0xff]  ;;  %v302_v29 = vld [vmem:[#allocation8 + $0x8] sm:$0xff] }
  0x23   :  { %258 = vmatpush.msra.mxu3 %v233_v6  ;;  %v447_v20 = vld [vmem:[%s783_s7] ss:$0 sm:$0xff]  ;;  %224 = vmatpush.msra.mxu2 %v202_v25  ;;  %v304_v27 = vld [vmem:[#allocation8 + $0x18] sm:$0xff]  ;;  %v301_v30 = vld [vmem:[#allocation8] sm:$0xff] }
  0x24   :  { %292 = vmatpush.msrb.mxu0 %v269_v12  ;;  %v201_v26 = vld [vmem:[%s779_s3] sm:$0xff]  ;;  %324 = vmatpush.msrb.mxu1 %v304_v27  ;;  %v338_v41 = vld [vmem:[%s786_s10 + $0x18] sm:$0xff]  ;;  %v337_v42 = vld [vmem:[%s786_s10 + $0x10] sm:$0xff] }
  0x25   :  { %259 = vmatpush.msra.mxu3 %v232_v7  ;;  %225 = vmatpush.msra.mxu2 %v201_v26  ;;  %v303_v28 = vld [vmem:[#allocation8 + $0x10] sm:$0xff]  ;;  %v336_v43 = vld [vmem:[%s786_s10 + $0x8] sm:$0xff] }
  0x26   :  { %431 = vmatmul.msk.f32.vlgmr.msra.gmra.mxu3 %vm240_vm1, %v231_v8  ;;  %293 = vmatpush.msrb.mxu0 %v268_v13  ;;  %v448_v31 = vld [vmem:[%s778_s2 + $0x1] ss:$0 sm:$0xff]  ;;  %v368_v45 = vld [vmem:[%s788_s12 + $0x8] sm:$0xff]  ;;  %v453_v61 = vld [vmem:[#allocation2] ss:$0 sm:$0xff] }
  0x27   :  { %325 = vmatpush.msrb.mxu1 %v303_v28  ;;  %v449_v36 = vld [vmem:[%s783_s7 + $0x1] ss:$0 sm:$0xff]  ;;  %358 = vmatpush.msrb.mxu2 %v338_v41  ;;  %v451_v48 = vld [vmem:[#allocation10] ss:$0 sm:$0xff]  ;;  %v452_v57 = vld [vmem:[#allocation11] ss:$0 sm:$0xff] }
  0x28   :  { %294 = vmatpush.msrb.mxu0 %v267_v14  ;;  %v335_v44 = vld [vmem:[%s786_s10] sm:$0xff]  ;;  %390 = vmatpush.msrb.mxu3 %v368_v45 }
  0x29   :  { %326 = vmatpush.msrb.mxu1 %v302_v29  ;;  %359 = vmatpush.msrb.mxu2 %v337_v42  ;;  %v450_v46 = vld [vmem:[#allocation3] ss:$0 sm:$0xff] }
  0x2a   :  { %v367_v56 = vld [vmem:[%s788_s12] sm:$0xff] }
  0x2b   :  { %327 = vmatpush.msrb.mxu1 %v301_v30  ;;  %360 = vmatpush.msrb.mxu2 %v336_v43 }
  0x2c   :  { %391 = vmatpush.msrb.mxu3 %v367_v56 }
  0x2d   :  { %361 = vmatpush.msrb.mxu2 %v335_v44 }
  0x9e   :  { %v163_v16 = vpop.f32.mrf.mxu0 }
  0x9f   :  { %v164_v17 = vadd.f32 %v446_v15, %v163_v16 }
  0xa1   :  { %v166_v18 = vmul.f32 %v164_v17, %v135_v5 }
  0xa3   :  { %v167_v19 = vadd.f32 %v166_v18, %v135_v5 }
  0xa5   :  { %429 = vmatmul.msk.f32.vlgmr.msra.gmra.mxu1 %vm142_vm0, %v167_v19 }
  0xa9   :  { %v261_v21 = vpop.f32.mrf.mxu3 }
  0xaa   :  { %v262_v22 = vadd.f32 %v447_v20, %v261_v21 }
  0xac   :  { %v264_v23 = vmul.f32 %v262_v22, %v231_v8 }
  0xae   :  { %v265_v24 = vadd.f32 %v264_v23, %v231_v8 }
  0xb0   :  { %433 = vmatmul.msk.f32.vlgmr.msrb.gmra.mxu0 %vm240_vm1, %v265_v24 }
 0x122   :  { %v196_v32 = vpop.f32.mrf.mxu1 }
 0x123   :  { %v197_v33 = vadd.f32 %v448_v31, %v196_v32 }
 0x125   :  { %v199_v34 = vmul.f32 %v197_v33, %v135_v5 }
 0x127   :  { %v200_v35 = vadd.f32 %v199_v34, %v167_v19 }
 0x129   :  { %430 = vmatmul.msk.f32.vlgmr.msra.gmra.mxu2 %vm142_vm0, %v200_v35 }
 0x12d   :  { %v296_v37 = vpop.f32.mrf.mxu0 }
 0x12e   :  { %v297_v38 = vadd.f32 %v449_v36, %v296_v37 }
 0x130   :  { %v299_v39 = vmul.f32 %v297_v38, %v231_v8 }
 0x132   :  { %v300_v40 = vadd.f32 %v299_v39, %v265_v24 }
 0x134   :  { %434 = vmatmul.msk.f32.vlgmr.msrb.gmra.mxu1 %vm240_vm1, %v300_v40 }
 0x1ac   :  { %v227_v47 = vpop.f32.mrf.mxu2 }
 0x1ad   :  { %v228_v49 = vadd.f32 %v450_v46, %v227_v47 }
 0x1af   :  { %v230_v52 = vmax.f32 %v228_v49, 0.0 }
 0x1b1   :  { %v329_v50 = vpop.f32.mrf.mxu1 }
 0x1b2   :  { %v330_v51 = vadd.f32 %v451_v48, %v329_v50 }
 0x1b4   :  { %v332_v53 = vmax.f32 %v330_v51, 0.0 }
 0x1b6   :  { %v333_v54 = vadd.f32 %v332_v53, %v230_v52 }
 0x1b8   :  { %v334_v55 = vmul.f32 0.5, %v333_v54 }
 0x1ba   :  { %435 = vmatmul.msk.f32.vlgmr.msrb.gmra.mxu2 %vm240_vm1, %v334_v55 }
 0x23d   :  { %v363_v58 = vpop.f32.mrf.mxu2 }
 0x23e   :  { %v364_v59 = vadd.f32 %v452_v57, %v363_v58 }
 0x240   :  { %v366_v60 = vmax.f32 %v364_v59, 0.0 }
 0x242   :  { %436 = vmatmul.msk.f32.vlgmr.msrb.gmra.mxu3 %vm142_vm0, %v366_v60 }
 0x2c5   :  { %v393_v62 = vpop.f32.mrf.mxu3 }
 0x2c6   :  { %v394_v63 = vadd.f32 %v453_v61, %v393_v62 }
 0x2c8   :  { %v437_v0 = vmul.f32 -1.442695, %v394_v63 }
 0x2ca   :  { %454 = vpow2.f32 %v437_v0 }
 0x2d0   :  { %v455_v1 = vpop.eup %454 }
 0x2d1   :  { %v399_v2 = vadd.f32 1.0, %v455_v1 }
 0x2d3   :  { %456 = vrcp.f32 %v399_v2  ;;  %v411_v6 = vand.u32 2147483648, %v399_v2  ;;  %v409_v8 = vand.u32 2147483647, %v399_v2  ;;  %vm405_vm3 = vweird.f32 %v399_v2 }
 0x2d5   :  { %v412_v10 = vor.u32 1.1754944e-38, %v411_v6  ;;  %vm410_vm6 = vcmp.eq.f32.partialorder %v409_v8, 8.507059e+37 }
 0x2d9   :  { %v457_v3 = vpop.eup %456 }
 0x2da   :  { %v401_v4 = vmul.f32 %v457_v3, %v399_v2  ;;  %vm406_vm2 = vweird.f32 %v457_v3 }
 0x2db   :  { %vm407_vm4 = vmor %vm405_vm3, %vm406_vm2 }
 0x2dc   :  { %v402_v5 = vsub.f32 1.0, %v401_v4 }
 0x2de   :  { %v403_v7 = vmul.f32 %v457_v3, %v402_v5 }
 0x2e0   :  { %v404_v9 = vadd.f32 %v457_v3, %v403_v7 }
 0x2e2   :  { %v408_v11 = vsel %vm407_vm4, %v457_v3, %v404_v9 }
 0x2e3   :  { %v413_v12 = vsel %vm410_vm6, %v412_v10, %v408_v11 }
 0x2e4   :  { %416 = vst.msk [vmem:[%s790_s14] sm:$0xff] %vm415_vm5, %v413_v12 }
 0x2e5   :  { %421 = vsyncpa [#allocation4], 1 }
 0x2e6   :  { %422 = vsyncpa [#allocation6], 1 }
 0x2e7   :  { %423 = vsyncpa [#allocation9], 1 }
 0x2e8   :  { %424 = vsyncpa [#allocation12], 1 }

</bundles_post_ra>
